<compile_context>
chip_gen: v6e
topology: v6e:2x2x1
jax: 0.10.0
libtpu: 0.0.40
codegen_flags: <defaults>
</compile_context>

<pallas_src>
import math

import jax
import jax.numpy as jnp
from jax.experimental import pallas as pl
from jax.experimental.pallas import tpu as pltpu

_LANES = 128
_ROW_ALIGN = 32        # int8/bool native sublane tile
_MAX_TILE_ROWS = 4096  # 4096 x 128 x 4B = 2 MiB per f32 input block


def _gt_kernel(x_ref, y_ref, o_ref):
    # logical_and(x >= y, x != y)  ==  x > y   (single VALU compare)
    o_ref[...] = x_ref[...] > y_ref[...]


def _round_up(n, m):
    return ((n + m - 1) // m) * m


def logical_and_ge_ne(x, y):
    """Computes logical_and(x >= y, x != y) elementwise via a Pallas TPU kernel."""
    assert x.shape == y.shape, "inputs must have identical shapes"
    orig_shape = x.shape
    total = math.prod(orig_shape) if len(orig_shape) > 0 else 1

    # Lane-dense flattening: pad flat length to a multiple of 32*128 so the
    # (rows, 128) view has rows % 32 == 0 (whole bool output tiles).
    padded_total = _round_up(total, _ROW_ALIGN * _LANES)
    xf = x.reshape(-1)
    yf = y.reshape(-1)
    if padded_total != total:
        pad = padded_total - total
        xf = jnp.pad(xf, (0, pad))
        yf = jnp.pad(yf, (0, pad))

    rows = padded_total // _LANES
    x2 = xf.reshape(rows, _LANES)
    y2 = yf.reshape(rows, _LANES)

    # Fixed big tiles + cdiv grid (ragged last block is fine for elementwise).
    if rows <= 1024:
        # <= 0.5 MiB per input: single block, purely launch-overhead bound.
        tile_rows = rows
    else:
        # >= 2 grid steps (keeps both v7x TCs busy), <= 2 MiB/input block
        # (fits v5e's 16 MiB scoped-VMEM default with double-buffering).
        tile_rows = min(_MAX_TILE_ROWS, _round_up(pl.cdiv(rows, 2), _ROW_ALIGN))
    grid = (pl.cdiv(rows, tile_rows),)

    bytes_accessed = total * (x.dtype.itemsize + y.dtype.itemsize) + total  # +1B bool out

    out2 = pl.pallas_call(
        _gt_kernel,
        out_shape=jax.ShapeDtypeStruct((rows, _LANES), jnp.bool_),
        grid=grid,
        in_specs=[
            pl.BlockSpec((tile_rows, _LANES), lambda i: (i, 0)),
            pl.BlockSpec((tile_rows, _LANES), lambda i: (i, 0)),
        ],
        out_specs=pl.BlockSpec((tile_rows, _LANES), lambda i: (i, 0)),
        compiler_params=pltpu.CompilerParams(
            dimension_semantics=("parallel",)),
        cost_estimate=pl.CostEstimate(
            flops=total, transcendentals=0, bytes_accessed=bytes_accessed),
    )(x2, y2)

    out_flat = out2.reshape(-1)
    if padded_total != total:
        out_flat = out_flat[:total]
    return out_flat.reshape(orig_shape)


if __name__ == "__main__":
    key = jax.random.PRNGKey(0)
    kx, ky = jax.random.split(key)
    shape = (2, 4, 16, 16)  # small NCHW-like shape from the PyTorch test
    x = jax.random.normal(kx, shape, dtype=jnp.float32)
    y = jax.random.normal(ky, shape, dtype=jnp.float32)
    # Make some elements exactly equal so the `ne` branch matters.
    y = y.at[0, 0, :4, :4].set(x[0, 0, :4, :4])
    # Exercise NaN handling (original expression and x > y both give False).
    x = x.at[1, 3, 0, 0].set(jnp.nan)
    y = y.at[1, 3, 0, 1].set(jnp.nan)

    out = logical_and_ge_ne(x, y)
    out = jax.block_until_ready(out)

    # Reference check in plain JAX (same semantics as the torch module).
    ref = jnp.logical_and(x >= y, x != y)
    assert out.dtype == jnp.bool_
    assert bool(jnp.array_equal(out, ref))

    print("KERNEL_OK")
</pallas_src>

<mosaic_0001>
module attributes {stable_mosaic.version = 11 : i64} {
  func.func @_gt_kernel(%arg0: i32, %arg1: memref<32x128xf32, #tpu.memory_space<vmem>>, %arg2: memref<32x128xf32, #tpu.memory_space<vmem>>, %arg3: memref<32x128xi32, #tpu.memory_space<vmem>>) attributes {dimension_semantics = [#tpu.dimension_semantics<parallel>], iteration_bounds = array<i64: 1>, scalar_prefetch = 0 : i64, scratch_operands = 0 : i64, tpu.core_type = #tpu.core_type<tc>, window_params = [{transform_indices = @transform_0, window_bounds = array<i64: 32, 128>}, {transform_indices = @transform_1, window_bounds = array<i64: 32, 128>}, {transform_indices = @transform_2, window_bounds = array<i64: 32, 128>}]} {
    %c0 = arith.constant 0 : index
    %c0_0 = arith.constant 0 : index
    %0 = vector.load %arg1[%c0, %c0_0] : memref<32x128xf32, #tpu.memory_space<vmem>>, vector<32x128xf32>
    %c0_1 = arith.constant 0 : index
    %c0_2 = arith.constant 0 : index
    %1 = vector.load %arg2[%c0_1, %c0_2] : memref<32x128xf32, #tpu.memory_space<vmem>>, vector<32x128xf32>
    %2 = arith.cmpf ogt, %0, %1 : vector<32x128xf32>
    %c0_3 = arith.constant 0 : index
    %c0_4 = arith.constant 0 : index
    %3 = vector.load %arg3[%c0_3, %c0_4] : memref<32x128xi32, #tpu.memory_space<vmem>>, vector<32x128xi32>
    %4 = arith.extui %2 : vector<32x128xi1> to vector<32x128xi32>
    %cst = arith.constant dense<0> : vector<32x128xi32>
    %5 = arith.cmpi ne, %3, %cst : vector<32x128xi32>
    tpu.vector_store %arg3[%c0_3, %c0_4], %4 {strides = array<i32>} : memref<32x128xi32, #tpu.memory_space<vmem>>, vector<32x128xi32>,
    return
  }
  func.func @transform_0(%arg0: i32) -> (i32, i32) {
    %c0_i32 = arith.constant 0 : i32
    %c0_i32_0 = arith.constant 0 : i32
    return %arg0, %c0_i32 : i32, i32
  }
  func.func @transform_1(%arg0: i32) -> (i32, i32) {
    %c0_i32 = arith.constant 0 : i32
    %c0_i32_0 = arith.constant 0 : i32
    return %arg0, %c0_i32 : i32, i32
  }
  func.func @transform_2(%arg0: i32) -> (i32, i32) {
    %c0_i32 = arith.constant 0 : i32
    %c0_i32_0 = arith.constant 0 : i32
    return %arg0, %c0_i32 : i32, i32
  }
}

</mosaic_0001>

<bundles_post_ra>
// kernel: tpu_custom_call.1
= control target key start
LH: loop header
LB: loop body
LE: loop exit
PB: predicated region body
PF: predicated region fallthrough
CT: control target
= control target key end

     0   :  { %7 = vsyncpa [#allocation3], 0  ;;  %s152_s0 = inlined_call_operand.hbm [shape: f32[32,128], index: 0, kind: input, shape index: {}]   ;;  %s153_s1 = inlined_call_operand.hbm [shape: f32[32,128], index: 1, kind: input, shape index: {}]   ;;  %s154_s2 = inlined_call_operand.vmem [shape: s32[32,128], index: 2, kind: output, shape index: {}]  }
   0x1   :  { %8 = vsyncpa [#allocation5], 0  ;;  %s114_s9 = smov [#allocation2]  }
   0x2   :  { %s14_s10 = sshll.u32 %s114_s9, 4  ;;  %s15_s10 = int_to_ptr.vmem [resolvable:$true] %s14_s10 }
   0x3   :  { %s78_s11 = scalar_lea.vmem %s15_s10, 512  ;;  %p83_p1 = scmp.lt.s32.totalorder %s15_s10, %s15_s10 }
   0x4   :  { %p79_p0 = scmp.ne.s32.totalorder %s15_s10, %s78_s11  ;;  %p84_p2 = scmp.lt.s32.totalorder %s78_s11, %s78_s11 }
   0x6   :  { %p85_p3 = por %p84_p2, %p83_p1 }
   0x8   :  { %p86_p4 = pnand %p85_p3, %p79_p0 }
   0xa   :  { %89 = shalt.err (!%p86_p4)
}
   0xb   :  { %s115_s12 = smov 128   ;;  %s116_s13 = smov 8  }
   0xc   :  { %20 = dma.hbm_to_vmem [thread:$0]  %s152_s0, 512, %s15_s10, [#allocation3], %s115_s12, %s115_s12, %s116_s13  }
   0xd   :  { %s117_s16 = smov [#allocation4]  }
   0xe   :  { %s26_s17 = sshll.u32 %s117_s16, 4  ;;  %s27_s17 = int_to_ptr.vmem [resolvable:$true] %s26_s17 }
   0xf   :  { %s98_s18 = scalar_lea.vmem %s27_s17, 512  ;;  %p103_p6 = scmp.lt.s32.totalorder %s27_s17, %s27_s17 }
  0x10   :  { %p99_p5 = scmp.ne.s32.totalorder %s27_s17, %s98_s18  ;;  %p104_p7 = scmp.lt.s32.totalorder %s98_s18, %s98_s18 }
  0x12   :  { %p105_p8 = por %p104_p7, %p103_p6 }
  0x14   :  { %p106_p9 = pnand %p105_p8, %p99_p5 }
  0x16   :  { %109 = shalt.err (!%p106_p9)
}
  0x17   :  { %32 = dma.hbm_to_vmem [thread:$0]  %s153_s1, 512, %s27_s17, [#allocation5], %s115_s12, %s115_s12, %s116_s13  }
  0x18   :  { %110 = dma.done.wait [#allocation3], 512  }
  0x19   :  { %111 = vsyncadd [#allocation3], 4294966784 }
  0x1a   :  { %112 = dma.done.wait [#allocation5], 512  }
  0x1b   :  { %113 = vsyncadd [#allocation5], 4294966784  ;;  %v39_v0 = vld [vmem:[#allocation2] sm:$0xff]  ;;  %v40_v2 = vld [vmem:[#allocation2 + $0x8] sm:$0xff]  ;;  %v118_v6 = vmov 0  }
  0x1c   :  { %v43_v1 = vld [vmem:[#allocation4] sm:$0xff]  ;;  %v44_v3 = vld [vmem:[#allocation4 + $0x8] sm:$0xff]  ;;  %v41_v4 = vld [vmem:[#allocation2 + $0x10] sm:$0xff] }
  0x1d   :  { %vm47_vm0 = vcmp.gt.f32.partialorder %v39_v0, %v43_v1  ;;  %v45_v5 = vld [vmem:[#allocation4 + $0x10] sm:$0xff]  ;;  %vm48_vm1 = vcmp.gt.f32.partialorder %v40_v2, %v44_v3  ;;  %v42_v8 = vld [vmem:[#allocation2 + $0x18] sm:$0xff] }
  0x1e   :  { %v51_v7 = vsel %vm47_vm0, 1, %v118_v6  ;;  %vm49_vm2 = vcmp.gt.f32.partialorder %v41_v4, %v45_v5  ;;  %v46_v9 = vld [vmem:[#allocation4 + $0x18] sm:$0xff]  ;;  %v52_v10 = vsel %vm48_vm1, 1, %v118_v6 }
  0x1f   :  { %55 = vst [vmem:[%s154_s2] sm:$0xff] %v51_v7  ;;  %v53_v11 = vsel %vm49_vm2, 1, %v118_v6  ;;  %vm50_vm3 = vcmp.gt.f32.partialorder %v42_v8, %v46_v9  ;;  %56 = vst [vmem:[%s154_s2 + $0x8] sm:$0xff] %v52_v10 }
  0x20   :  { %57 = vst [vmem:[%s154_s2 + $0x10] sm:$0xff] %v53_v11  ;;  %v54_v12 = vsel %vm50_vm3, 1, %v118_v6 }
  0x21   :  { %58 = vst [vmem:[%s154_s2 + $0x18] sm:$0xff] %v54_v12 }
  0x22   :  { %63 = vsyncpa [#allocation3], 1 }
  0x23   :  { %64 = vsyncpa [#allocation5], 1 }

</bundles_post_ra>
